<compile_context>
chip_gen: v7x
topology: tpu7x:2x2x1
jax: 0.10.0
libtpu: 0.0.40
codegen_flags: <defaults>
</compile_context>

<pallas_src>
import jax
import jax.numpy as jnp
from jax.experimental import pallas as pl
from jax.experimental.pallas import tpu as pltpu

EPS = 1e-6


def _make_kernel(cin, small_cin):
    inv_cin = 1.0 / cin

    def kernel(x_ref, w_ref, b_ref, o_ref):
        # x_ref: (Cin, T)        spatial positions on lanes
        # w_ref: (Ncols, Cin)    gamma-folded deconv weight, rows ordered (co,kh,kw)
        # b_ref: (Ncols, 1)      beta-folded deconv bias
        # o_ref: (Ncols, T)
        x = x_ref[...].astype(jnp.float32)

        if small_cin:
            # Unrolled channel reductions + unrolled VPU broadcast-FMA contraction.
            tot = x[0:1, :]
            for ci in range(1, cin):
                tot = tot + x[ci:ci + 1, :]
            u = tot * inv_cin                                   # (1, T)
            xc = x - u                                          # (Cin, T)
            sq = xc[0:1, :] * xc[0:1, :]
            for ci in range(1, cin):
                sq = sq + xc[ci:ci + 1, :] * xc[ci:ci + 1, :]
            s = sq * inv_cin                                    # (1, T) biased var
            xn = xc * jax.lax.rsqrt(s + EPS)                    # rsqrt -> EUP slot
            acc = w_ref[:, 0:1] * xn[0:1, :]                    # (Ncols, T)
            for ci in range(1, cin):
                acc = acc + w_ref[:, ci:ci + 1] * xn[ci:ci + 1, :]
            y = acc + b_ref[...]
        else:
            u = jnp.mean(x, axis=0, keepdims=True)
            xc = x - u
            s = jnp.mean(xc * xc, axis=0, keepdims=True)
            xn = xc * jax.lax.rsqrt(s + EPS)
            y = jnp.dot(w_ref[...], xn,
                        preferred_element_type=jnp.float32) + b_ref[...]

        o_ref[...] = y.astype(o_ref.dtype)

    return kernel


def upsample_forward(x, gamma, beta, w_deconv, bias):
    """x: (N, Cin, D, H, W)           NCDHW, as in the PyTorch module
       gamma, beta: (Cin,)            LayerNorm affine parameters
       w_deconv: (Cin, Cout, 1, 2, 2) ConvTranspose3d weight
       bias: (Cout,)                  ConvTranspose3d bias
       returns: (N, Cout, D, 2H, 2W)
    """
    N, Cin, D, H, W = x.shape
    Cout = w_deconv.shape[1]
    Ncols = Cout * 4
    DHW = D * H * W

    # Contiguity-preserving reshape: no input transpose, no extra HBM traffic.
    x3 = x.reshape(N, Cin, DHW)

    # Fold the LayerNorm affine into the deconv weight/bias once, on the host.
    # Columns of w_mat are ordered (co, kh, kw) by the reshape.
    w_mat = w_deconv.reshape(Cin, Ncols).astype(jnp.float32)
    w_t = (gamma.astype(jnp.float32)[:, None] * w_mat).T           # (Ncols, Cin)
    b_col = (beta.astype(jnp.float32) @ w_mat
             + jnp.repeat(bias.astype(jnp.float32), 4)).reshape(Ncols, 1)

    # Lane-tile over the flattened spatial axis: as large as a comfortable
    # double-buffered VMEM budget allows; multiple of 128 (or the full extent).
    bytes_per_lane = (Cin + Ncols) * 4 * 2          # f32 in + out, double-buffered
    max_t = (12 * 1024 * 1024 // bytes_per_lane) // 128 * 128
    max_t = max(128, min(32768, max_t))
    T = DHW if DHW <= max_t else max_t
    grid = (N, pl.cdiv(DHW, T))

    kernel = _make_kernel(Cin, Cin <= 16)

    out_planes = pl.pallas_call(
        kernel,
        out_shape=jax.ShapeDtypeStruct((N, Ncols, DHW), x.dtype),
        grid_spec=pltpu.PrefetchScalarGridSpec(
            num_scalar_prefetch=0,
            grid=grid,
            in_specs=[
                pl.BlockSpec((None, Cin, T), lambda n, g: (n, 0, g)),
                pl.BlockSpec((Ncols, Cin), lambda n, g: (0, 0)),
                pl.BlockSpec((Ncols, 1), lambda n, g: (0, 0)),
            ],
            out_specs=pl.BlockSpec((None, Ncols, T), lambda n, g: (n, 0, g)),
        ),
        compiler_params=pltpu.CompilerParams(
            dimension_semantics=("parallel", "parallel"),
            vmem_limit_bytes=32 * 1024 * 1024,
        ),
    )(x3, w_t, b_col)

    # Single output-side rearrange:
    # (N, Cout*2*2, D, H, W) -> (N, Cout, D, 2H, 2W)
    out = out_planes.reshape(N, Cout, 2, 2, D, H, W)
    out = jnp.transpose(out, (0, 1, 4, 5, 2, 6, 3)).reshape(N, Cout, D, 2 * H, 2 * W)
    return out


def _reference(x, gamma, beta, w_deconv, bias):
    # Pure-JAX reference reproducing the PyTorch semantics.
    u = jnp.mean(x, axis=1, keepdims=True)
    s = jnp.mean((x - u) ** 2, axis=1, keepdims=True)
    xn = (x - u) / jnp.sqrt(s + EPS)
    xn = gamma[None, :, None, None, None] * xn + beta[None, :, None, None, None]
    # ConvTranspose3d with kernel==stride==(1,2,2):
    # out[n, co, d, 2h+kh, 2w+kw] = sum_ci xn[n,ci,d,h,w] * W[ci,co,0,kh,kw] + b[co]
    y = jnp.einsum('ncdhw,cokl->nodhwkl', xn, w_deconv[:, :, 0, :, :])
    N, Cout, D, H, W, _, _ = y.shape
    y = jnp.transpose(y, (0, 1, 2, 3, 5, 4, 6)).reshape(N, Cout, D, 2 * H, 2 * W)
    return y + bias[None, :, None, None, None]


if __name__ == "__main__":
    in_channels, out_channels = 4, 8
    N, D, H, W = 2, 2, 8, 8

    key = jax.random.PRNGKey(0)
    kx, kg, kb, kw, kbi = jax.random.split(key, 5)

    x = jax.random.normal(kx, (N, in_channels, D, H, W), dtype=jnp.float32)
    gamma = 1.0 + 0.1 * jax.random.normal(kg, (in_channels,), dtype=jnp.float32)
    beta = 0.1 * jax.random.normal(kb, (in_channels,), dtype=jnp.float32)
    w_deconv = 0.2 * jax.random.normal(kw, (in_channels, out_channels, 1, 2, 2), dtype=jnp.float32)
    bias = 0.05 * jax.random.normal(kbi, (out_channels,), dtype=jnp.float32)

    out = upsample_forward(x, gamma, beta, w_deconv, bias)
    out = jax.block_until_ready(out)

    ref = _reference(x, gamma, beta, w_deconv, bias)
    assert out.shape == (N, out_channels, D, 2 * H, 2 * W), out.shape
    assert jnp.allclose(out, ref, atol=1e-4, rtol=1e-4), float(jnp.max(jnp.abs(out - ref)))

    print("KERNEL_OK")
</pallas_src>

<mosaic_0001>
module attributes {stable_mosaic.version = 11 : i64} {
  func.func @kernel(%arg0: i32, %arg1: i32, %arg2: memref<1x4x128xf32, #tpu.memory_space<vmem>>, %arg3: memref<32x4xf32, #tpu.memory_space<vmem>>, %arg4: memref<32x1xf32, #tpu.memory_space<vmem>>, %arg5: memref<1x32x128xf32, #tpu.memory_space<vmem>>) attributes {dimension_semantics = [#tpu.dimension_semantics<parallel>, #tpu.dimension_semantics<parallel>], iteration_bounds = array<i64: 2, 1>, scalar_prefetch = 0 : i64, scratch_operands = 0 : i64, tpu.core_type = #tpu.core_type<tc>, window_params = [{transform_indices = @transform_0, window_bounds = array<i64: 1, 4, 128>}, {pipeline_mode = #tpu.pipeline_mode<synchronous>, transform_indices = @transform_1, window_bounds = array<i64: 32, 4>}, {pipeline_mode = #tpu.pipeline_mode<synchronous>, transform_indices = @transform_2, window_bounds = array<i64: 32, 1>}, {transform_indices = @transform_3, window_bounds = array<i64: 1, 32, 128>}]} {
    %c0 = arith.constant 0 : index
    %c0_0 = arith.constant 0 : index
    %c0_1 = arith.constant 0 : index
    %0 = vector.load %arg2[%c0, %c0_0, %c0_1] : memref<1x4x128xf32, #tpu.memory_space<vmem>>, vector<1x4x128xf32>
    %1 = vector.shape_cast %0 : vector<1x4x128xf32> to vector<4x128xf32>
    %2 = vector.extract_strided_slice %1 {offsets = [0, 0], sizes = [1, 128], strides = [1, 1]} : vector<4x128xf32> to vector<1x128xf32>
    %3 = vector.extract_strided_slice %1 {offsets = [1, 0], sizes = [1, 128], strides = [1, 1]} : vector<4x128xf32> to vector<1x128xf32>
    %4 = arith.addf %2, %3 : vector<1x128xf32>
    %5 = vector.extract_strided_slice %1 {offsets = [2, 0], sizes = [1, 128], strides = [1, 1]} : vector<4x128xf32> to vector<1x128xf32>
    %6 = arith.addf %4, %5 : vector<1x128xf32>
    %7 = vector.extract_strided_slice %1 {offsets = [3, 0], sizes = [1, 128], strides = [1, 1]} : vector<4x128xf32> to vector<1x128xf32>
    %8 = arith.addf %6, %7 : vector<1x128xf32>
    %cst = arith.constant 2.500000e-01 : f32
    %9 = vector.broadcast %cst : f32 to vector<1x128xf32>
    %10 = arith.mulf %8, %9 : vector<1x128xf32>
    %11 = vector.broadcast %10 : vector<1x128xf32> to vector<4x128xf32>
    %12 = arith.subf %1, %11 : vector<4x128xf32>
    %13 = vector.extract_strided_slice %12 {offsets = [0, 0], sizes = [1, 128], strides = [1, 1]} : vector<4x128xf32> to vector<1x128xf32>
    %14 = vector.extract_strided_slice %12 {offsets = [0, 0], sizes = [1, 128], strides = [1, 1]} : vector<4x128xf32> to vector<1x128xf32>
    %15 = arith.mulf %13, %14 : vector<1x128xf32>
    %16 = vector.extract_strided_slice %12 {offsets = [1, 0], sizes = [1, 128], strides = [1, 1]} : vector<4x128xf32> to vector<1x128xf32>
    %17 = vector.extract_strided_slice %12 {offsets = [1, 0], sizes = [1, 128], strides = [1, 1]} : vector<4x128xf32> to vector<1x128xf32>
    %18 = arith.mulf %16, %17 : vector<1x128xf32>
    %19 = arith.addf %15, %18 : vector<1x128xf32>
    %20 = vector.extract_strided_slice %12 {offsets = [2, 0], sizes = [1, 128], strides = [1, 1]} : vector<4x128xf32> to vector<1x128xf32>
    %21 = vector.extract_strided_slice %12 {offsets = [2, 0], sizes = [1, 128], strides = [1, 1]} : vector<4x128xf32> to vector<1x128xf32>
    %22 = arith.mulf %20, %21 : vector<1x128xf32>
    %23 = arith.addf %19, %22 : vector<1x128xf32>
    %24 = vector.extract_strided_slice %12 {offsets = [3, 0], sizes = [1, 128], strides = [1, 1]} : vector<4x128xf32> to vector<1x128xf32>
    %25 = vector.extract_strided_slice %12 {offsets = [3, 0], sizes = [1, 128], strides = [1, 1]} : vector<4x128xf32> to vector<1x128xf32>
    %26 = arith.mulf %24, %25 : vector<1x128xf32>
    %27 = arith.addf %23, %26 : vector<1x128xf32>
    %cst_2 = arith.constant 2.500000e-01 : f32
    %28 = vector.broadcast %cst_2 : f32 to vector<1x128xf32>
    %29 = arith.mulf %27, %28 : vector<1x128xf32>
    %cst_3 = arith.constant 9.99999997E-7 : f32
    %30 = vector.broadcast %cst_3 : f32 to vector<1x128xf32>
    %31 = arith.addf %29, %30 : vector<1x128xf32>
    %32 = math.rsqrt %31 : vector<1x128xf32>
    %33 = vector.broadcast %32 : vector<1x128xf32> to vector<4x128xf32>
    %34 = arith.mulf %12, %33 : vector<4x128xf32>
    %c0_4 = arith.constant 0 : index
    %c0_5 = arith.constant 0 : index
    %35 = vector.load %arg3[%c0_4, %c0_5] : memref<32x4xf32, #tpu.memory_space<vmem>>, vector<32x1xf32>
    %36 = vector.extract_strided_slice %34 {offsets = [0, 0], sizes = [1, 128], strides = [1, 1]} : vector<4x128xf32> to vector<1x128xf32>
    %37 = vector.broadcast %35 : vector<32x1xf32> to vector<32x128xf32>
    %38 = vector.broadcast %36 : vector<1x128xf32> to vector<32x128xf32>
    %39 = arith.mulf %37, %38 : vector<32x128xf32>
    %c0_6 = arith.constant 0 : index
    %c1 = arith.constant 1 : index
    %40 = vector.load %arg3[%c0_6, %c1] : memref<32x4xf32, #tpu.memory_space<vmem>>, vector<32x1xf32>
    %41 = vector.extract_strided_slice %34 {offsets = [1, 0], sizes = [1, 128], strides = [1, 1]} : vector<4x128xf32> to vector<1x128xf32>
    %42 = vector.broadcast %40 : vector<32x1xf32> to vector<32x128xf32>
    %43 = vector.broadcast %41 : vector<1x128xf32> to vector<32x128xf32>
    %44 = arith.mulf %42, %43 : vector<32x128xf32>
    %45 = arith.addf %39, %44 : vector<32x128xf32>
    %c0_7 = arith.constant 0 : index
    %c2 = arith.constant 2 : index
    %46 = vector.load %arg3[%c0_7, %c2] : memref<32x4xf32, #tpu.memory_space<vmem>>, vector<32x1xf32>
    %47 = vector.extract_strided_slice %34 {offsets = [2, 0], sizes = [1, 128], strides = [1, 1]} : vector<4x128xf32> to vector<1x128xf32>
    %48 = vector.broadcast %46 : vector<32x1xf32> to vector<32x128xf32>
    %49 = vector.broadcast %47 : vector<1x128xf32> to vector<32x128xf32>
    %50 = arith.mulf %48, %49 : vector<32x128xf32>
    %51 = arith.addf %45, %50 : vector<32x128xf32>
    %c0_8 = arith.constant 0 : index
    %c3 = arith.constant 3 : index
    %52 = vector.load %arg3[%c0_8, %c3] : memref<32x4xf32, #tpu.memory_space<vmem>>, vector<32x1xf32>
    %53 = vector.extract_strided_slice %34 {offsets = [3, 0], sizes = [1, 128], strides = [1, 1]} : vector<4x128xf32> to vector<1x128xf32>
    %54 = vector.broadcast %52 : vector<32x1xf32> to vector<32x128xf32>
    %55 = vector.broadcast %53 : vector<1x128xf32> to vector<32x128xf32>
    %56 = arith.mulf %54, %55 : vector<32x128xf32>
    %57 = arith.addf %51, %56 : vector<32x128xf32>
    %c0_9 = arith.constant 0 : index
    %c0_10 = arith.constant 0 : index
    %58 = vector.load %arg4[%c0_9, %c0_10] : memref<32x1xf32, #tpu.memory_space<vmem>>, vector<32x1xf32>
    %59 = vector.broadcast %58 : vector<32x1xf32> to vector<32x128xf32>
    %60 = arith.addf %57, %59 : vector<32x128xf32>
    %c0_11 = arith.constant 0 : index
    %c0_12 = arith.constant 0 : index
    %c0_13 = arith.constant 0 : index
    %61 = vector.load %arg5[%c0_11, %c0_12, %c0_13] : memref<1x32x128xf32, #tpu.memory_space<vmem>>, vector<1x32x128xf32>
    %62 = vector.shape_cast %61 : vector<1x32x128xf32> to vector<32x128xf32>
    %63 = vector.shape_cast %60 : vector<32x128xf32> to vector<1x32x128xf32>
    tpu.vector_store %arg5[%c0_11, %c0_12, %c0_13], %63 {strides = array<i32>} : memref<1x32x128xf32, #tpu.memory_space<vmem>>, vector<1x32x128xf32>,
    return
  }
  func.func @transform_0(%arg0: i32, %arg1: i32) -> (i32, i32, i32) {
    %c0_i32 = arith.constant 0 : i32
    %c0_i32_0 = arith.constant 0 : i32
    return %arg0, %c0_i32, %arg1 : i32, i32, i32
  }
  func.func @transform_1(%arg0: i32, %arg1: i32) -> (i32, i32) {
    %c0_i32 = arith.constant 0 : i32
    %c0_i32_0 = arith.constant 0 : i32
    %c0_i32_1 = arith.constant 0 : i32
    return %c0_i32, %c0_i32_0 : i32, i32
  }
  func.func @transform_2(%arg0: i32, %arg1: i32) -> (i32, i32) {
    %c0_i32 = arith.constant 0 : i32
    %c0_i32_0 = arith.constant 0 : i32
    %c0_i32_1 = arith.constant 0 : i32
    return %c0_i32, %c0_i32_0 : i32, i32
  }
  func.func @transform_3(%arg0: i32, %arg1: i32) -> (i32, i32, i32) {
    %c0_i32 = arith.constant 0 : i32
    %c0_i32_0 = arith.constant 0 : i32
    return %arg0, %c0_i32, %arg1 : i32, i32, i32
  }
}

</mosaic_0001>

<bundles_post_ra>
// kernel: tpu_custom_call.1
= control target key start
LH: loop header
LB: loop body
LE: loop exit
PB: predicated region body
PF: predicated region fallthrough
CT: control target
= control target key end

     0   :  { %8 = vsyncpa [#allocation3], 0  ;;  %s801_s0 = inlined_call_operand.vmem [shape: f32[2,4,128], index: 0, kind: input, shape index: {}]   ;;  %s802_s1 = inlined_call_operand.vmem [shape: f32[32,4], index: 1, kind: input, shape index: {}]   ;;  %s803_s2 = inlined_call_operand.vmem [shape: f32[32,1], index: 2, kind: input, shape index: {}]   ;;  %s804_s3 = inlined_call_operand.hbm [shape: f32[2,32,128], index: 3, kind: output, shape index: {}]  }
   0x1   :  { %10 = vsyncpa [#allocation3 + $0x1], 0  ;;  %s658_s12 = smov 0   ;;  %s660_s13 = smov 0  }
   0x2   :  { %s662_s14 = smov 0   ;;  %s664_s15 = smov 0  }
   0x3   :  { %s666_s16 = smov 0   ;;  %s668_s17 = smov 0  }
   0x4 LB: > { %s465_s18 = sadd.s32 4294967295, %s629_s17   ;;  %s466_s19 = sadd.s32 4294967294, %s629_s17   ;;  %s629_s17 = sphi %s668_s17, %s16_s17   ;;  %s625_s16 = sphi %s666_s16, %s811_s16   ;;  %s621_s15 = sphi %s664_s15, %s810_s15   ;;  %s617_s14 = sphi %s662_s14, %s809_s14   ;;  %s613_s13 = sphi %s660_s13, %s808_s13   ;;  %s609_s12 = sphi %s658_s12, %s807_s12  }
   0x5   : > { %s28_s20 = sadd.s32 1, %s625_s16  ;;  %s107_s21 = sadd.s32 1, %s617_s14 }
   0x6   : > { %p30_p0 = scmp.ge.s32.totalorder %s28_s20, 2  ;;  %p117_p1 = scmp.ne.s32.totalorder %s617_s14, %s613_s13 }
   0x7   : > { %p118_p2 = scmp.eq.s32.totalorder %s465_s18, 1  ;;  %p123_p3 = scmp.ne.s32.totalorder %s613_s13, %s609_s12 }
   0x8   : > { %s813_s20 = smov (%p30_p0, %s28_s20), 0  ;;  %p124_p5 = scmp.eq.s32.totalorder %s466_s19, 1 }
   0x9   : > { %p698_p4 = por %p118_p2, %p117_p1  ;;  %s102_s23 = ssub.s32 %s625_s16, %s813_s20 }
   0xa   : > { %p469_p6 = scmp.ge.s32.totalorder %s629_s17, 1  ;;  %p105_p7 = scmp.eq.s32.totalorder %s102_s23, 0 }
   0xb   : > { %p705_p8 = por %p124_p5, %p123_p3  ;;  %p158_p9 = scmp.lt.s32.totalorder %s629_s17, 3 }
   0xc   : > { %s711_s25 = scalar_select %p105_p7, %s617_s14, %s107_s21  }
   0xd   : > { %p159_p10 = pnand %p469_p6, %p158_p9 }
   0xe   : > { %v229_v0 = vld [vmem:[%s802_s1 + $0x10] sm:$0xff] (!%p159_p10)  ;;  %v227_v1 = vld [vmem:[%s802_s1] sm:$0xff] (!%p159_p10)  ;;  %v631_v2 = vmov (!%p159_p10), 0   ;;  %v230_v3 = vld [vmem:[%s802_s1 + $0x18] sm:$0xff] (!%p159_p10)  ;;  %v632_v5 = vmov (!%p159_p10), 1   ;;  %v633_v6 = vmov (!%p159_p10), 2   ;;  %v203_v18 = vlaneseq (!%p159_p10) }
   0xf   : > { %162 = sbr.rel (%p159_p10) target bundleno = 209 (0xd1), region = 32  ;;  %540 = vset.pattern.permute.xlu1 (!%p159_p10), %v631_v2  ;;  %539 = vset.pattern.permute.xlu0 (!%p159_p10), %v631_v2  ;;  %v228_v4 = vld [vmem:[%s802_s1 + $0x8] sm:$0xff] (!%p159_p10)  ;;  %v634_v7 = vmov (!%p159_p10), 3   ;;  %v343_v9 = vld [vmem:[%s803_s2] sm:$0xff] (!%p159_p10)  ;;  %v345_v10 = vld [vmem:[%s803_s2 + $0x10] sm:$0xff] (!%p159_p10)  ;;  %p184_p11 = scmp.lt.s32.totalorder (!%p159_p10), %s621_s15, 1 }
  0x10   : > { %243 = vperm.xlu1 (!%p159_p10), %540, %v229_v0   ;;  %233 = vperm.xlu0 (!%p159_p10), %539, %v227_v1   ;;  %v344_v8 = vld [vmem:[%s803_s2 + $0x8] sm:$0xff] (!%p159_p10)  ;;  %v346_v11 = vld [vmem:[%s803_s2 + $0x18] sm:$0xff] (!%p159_p10)  ;;  %v204_v20 = vshrl.u32 (!%p159_p10), %v203_v18, 7  ;;  %s181_s30 = sand.u32 (!%p159_p10), 1, %s613_s13   ;;  %s477_s7 = sshll.u32 (!%p159_p10), %s621_s15, 9 }
  0x11   : > { %s470_s4 = sshll.u32 (!%p159_p10), %s181_s30, 5  ;;  %s751_s10 = scalar_lea.hbm (!%p159_p10), %s804_s3, %s477_s7 }
  0x12   : > { %v205_v22 = vsub.s32 (!%p159_p10), 0, %v204_v20  ;;  %v277_v44 = vsub.s32 (!%p159_p10), 1, %v204_v20  ;;  %v305_v48 = vsub.s32 (!%p159_p10), 2, %v204_v20  ;;  %v333_v56 = vsub.s32 (!%p159_p10), 3, %v204_v20  ;;  %s183_s5 = scalar_lea.vmem (!%p159_p10), [#allocation2], %s470_s4  ;;  %s755_s11 = scalar_lea.sflag (!%p159_p10), [#allocation3], %s181_s30 }
  0x13   : > { %s390_s6 = sshll.u32 (!%p159_p10), %s183_s5, 4  ;;  %s746_s6 = int_to_ptr.vmem [resolvable:$true] %s390_s6 }
  0x14   : > { %248 = vperm.xlu1 (!%p159_p10), %540, %v230_v3   ;;  %238 = vperm.xlu0 (!%p159_p10), %539, %v228_v4   ;;  %s551_s18 = scalar_lea.vmem (!%p159_p10), %s746_s6, 512 }
  0x15   : > { %p552_p12 = scmp.ne.s32.totalorder (!%p159_p10), %s746_s6, %s551_s18 }
  0x16   : > { %s185_s23 = scalar_select %p184_p11, %s621_s15, 1 }
  0x17   : > { %p553_p13 = pnand %p552_p12, %p698_p4  ;;  %s635_s15 = smov [#allocation2]  }
  0x18   : > { %542 = vset.pattern.permute.xlu1 %v632_v5  ;;  %541 = vset.pattern.permute.xlu0 %v632_v5  ;;  %s471_s26 = sshll.u32 %s185_s23, 2  ;;  %s555_s19 = sshll.u32 %s635_s15, 4  ;;  %s556_s19 = int_to_ptr.vmem [resolvable:$false] %s555_s19 }
  0x19   : > { %264 = vperm.xlu1 %542, %v228_v4   ;;  %260 = vperm.xlu0 %541, %v227_v1   ;;  %s190_s29 = scalar_lea.vmem %s801_s0, %s471_s26  ;;  %p554_p0 = pneg %p553_p13 }
  0x1a   : > { %v191_v12 = vld [vmem:[%s190_s29] sm:$0xf]  ;;  %s557_s21 = scalar_lea.vmem %s556_s19, 1024  ;;  %p558_p1 = scmp.lt.s32.totalorder %s746_s6, %s556_s19 }
  0x1b   : > { %v193_v13 = vrot.slane %v191_v12, 1  ;;  %v196_v15 = vrot.slane %v191_v12, 2  ;;  %v199_v17 = vrot.slane %v191_v12, 3  ;;  %p559_p2 = scmp.lt.s32.totalorder %s557_s21, %s551_s18 }
  0x1d   : > { %268 = vperm.xlu1 %542, %v229_v0   ;;  %272 = vperm.xlu0 %541, %v230_v3   ;;  %v195_v14 = vadd.f32 %v193_v13, %v191_v12  ;;  %p560_p3 = por %p559_p2, %p558_p1 }
  0x1f   : > { %v198_v16 = vadd.f32 %v196_v15, %v195_v14  ;;  %p561_p5 = pnand %p560_p3, %p554_p0 }
  0x21   : > { %543 = vset.pattern.permute.xlu1 %v633_v6  ;;  %544 = vset.pattern.permute.xlu0 %v633_v6  ;;  %v201_v19 = vadd.f32 %v199_v17, %v198_v16 }
  0x22   : > { %288 = vperm.xlu1 %543, %v227_v1   ;;  %292 = vperm.xlu0 %544, %v228_v4  }
  0x23   : > { %v202_v21 = vmul.f32 0.25, %v201_v19 }
  0x25   : > { %v206_v23 = vrot.slane %v202_v21, %v205_v22 }
  0x26   : > { %296 = vperm.xlu1 %543, %v229_v0   ;;  %545 = vset.pattern.permute.xlu0 %v634_v7 }
  0x27   : > { %316 = vperm.xlu0 %545, %v227_v1   ;;  %v207_v24 = vsub.f32 %v191_v12, %v206_v23 }
  0x29   : > { %v208_v25 = vmul.f32 %v207_v24, %v207_v24 }
  0x2a   : > { %300 = vperm.xlu1 %543, %v230_v3  }
  0x2b   : > { %328 = vperm.xlu0 %545, %v230_v3   ;;  %v210_v26 = vrot.slane %v208_v25, 1  ;;  %v213_v28 = vrot.slane %v208_v25, 2  ;;  %v216_v30 = vrot.slane %v208_v25, 3 }
  0x2d   : > { %v212_v27 = vadd.f32 %v210_v26, %v208_v25 }
  0x2e   : > { %546 = vset.pattern.permute.xlu1 %v634_v7 }
  0x2f   : > { %320 = vperm.xlu1 %546, %v228_v4   ;;  %548 = vset.pattern.permute.xlu0 %v631_v2  ;;  %v215_v29 = vadd.f32 %v213_v28, %v212_v27 }
  0x30   : > { %354 = vperm.xlu0 %548, %v344_v8  }
  0x31   : > { %v218_v31 = vadd.f32 %v216_v30, %v215_v29 }
  0x33   : > { %324 = vperm.xlu1 %546, %v229_v0   ;;  %v219_v32 = vmul.f32 0.25, %v218_v31 }
  0x35   : > { %v220_v33 = vadd.f32 1e-06, %v219_v32 }
  0x37   : > { %547 = vset.pattern.permute.xlu1 %v631_v2  ;;  %549 = vrsqrt.f32 %v220_v33 }
  0x38   : > { %349 = vperm.xlu1 %547, %v343_v9  }
  0x3c   : > { %359 = vperm.xlu1 %547, %v345_v10  }
  0x40   : > { %364 = vperm.xlu1 %547, %v346_v11  }
  0x41   : > { %v550_v40 = vpop.eup %549 }
  0x42   : > { %v225_v43 = vrot.slane %v550_v40, %v205_v22 }
  0x44   : > { %v226_v47 = vmul.f32 %v225_v43, %v207_v24 }
  0x46   : > { %v278_v49 = vrot.slane %v226_v47, %v277_v44  ;;  %v254_v52 = vrot.slane %v226_v47, %v205_v22  ;;  %v306_v53 = vrot.slane %v226_v47, %v305_v48  ;;  %v334_v63 = vrot.slane %v226_v47, %v333_v56 }
  0x8f   : > { %v244_v34 = vpop.permute.xlu1 %243  ;;  %v234_v35 = vpop.permute.xlu0 %233 }
  0x90   : > { %v255_v59 = vmul.f32 %v254_v52, %v234_v35  ;;  %v257_v11 = vmul.f32 %v254_v52, %v244_v34 }
  0x93   : > { %v249_v36 = vpop.permute.xlu1 %248  ;;  %v239_v37 = vpop.permute.xlu0 %238 }
  0x94   : > { %v256_v54 = vmul.f32 %v254_v52, %v239_v37  ;;  %v258_v15 = vmul.f32 %v254_v52, %v249_v36 }
  0x98   : > { %v265_v38 = vpop.permute.xlu1 %264  ;;  %v261_v39 = vpop.permute.xlu0 %260 }
  0x99   : > { %v280_v55 = vmul.f32 %v278_v49, %v265_v38  ;;  %v279_v60 = vmul.f32 %v278_v49, %v261_v39 }
  0x9b   : > { %v284_v62 = vadd.f32 %v280_v55, %v256_v54  ;;  %v283_v3 = vadd.f32 %v279_v60, %v255_v59 }
  0x9c   : > { %v269_v41 = vpop.permute.xlu1 %268  ;;  %v273_v42 = vpop.permute.xlu0 %272 }
  0x9d   : > { %v281_v7 = vmul.f32 %v278_v49, %v269_v41  ;;  %v282_v12 = vmul.f32 %v278_v49, %v273_v42 }
  0x9f   : > { %v285_v16 = vadd.f32 %v281_v7, %v257_v11  ;;  %v286_v21 = vadd.f32 %v282_v12, %v258_v15 }
  0xa1   : > { %v289_v45 = vpop.permute.xlu1 %288  ;;  %v293_v46 = vpop.permute.xlu0 %292 }
  0xa2   : > { %v308_v58 = vmul.f32 %v306_v53, %v293_v46  ;;  %v307_v4 = vmul.f32 %v306_v53, %v289_v45 }
  0xa4   : > { %v312_v1 = vadd.f32 %v308_v58, %v284_v62  ;;  %v311_v13 = vadd.f32 %v307_v4, %v283_v3 }
  0xa5   : > { %v297_v50 = vpop.permute.xlu1 %296 }
  0xa6   : > { %v317_v51 = vpop.permute.xlu0 %316  ;;  %v309_v14 = vmul.f32 %v306_v53, %v297_v50 }
  0xa7   : > { %v335_v8 = vmul.f32 %v334_v63, %v317_v51 }
  0xa8   : > { %v313_v22 = vadd.f32 %v309_v14, %v285_v16 }
  0xa9   : > { %v301_v57 = vpop.permute.xlu1 %300  ;;  %v339_v19 = vadd.f32 %v335_v8, %v311_v13 }
  0xaa   : > { %v329_v61 = vpop.permute.xlu0 %328  ;;  %v310_v17 = vmul.f32 %v306_v53, %v301_v57 }
  0xab   : > { %v338_v25 = vmul.f32 %v334_v63, %v329_v61 }
  0xac   : > { %v314_v24 = vadd.f32 %v310_v17, %v286_v21 }
  0xae   : > { %v321_v0 = vpop.permute.xlu1 %320  ;;  %v342_v29 = vadd.f32 %v338_v25, %v314_v24 }
  0xaf   : > { %v336_v2 = vmul.f32 %v334_v63, %v321_v0  ;;  %v355_v5 = vpop.permute.xlu0 %354 }
  0xb1   : > { %v340_v6 = vadd.f32 %v336_v2, %v312_v1 }
  0xb2   : > { %v325_v9 = vpop.permute.xlu1 %324 }
  0xb3   : > { %v368_v10 = vadd.f32 %v355_v5, %v340_v6  ;;  %v337_v18 = vmul.f32 %v334_v63, %v325_v9 }
  0xb5   : > { %372 = vst [vmem:[%s183_s5 + $0x8] sm:$0xff] %v368_v10  ;;  %v341_v26 = vadd.f32 %v337_v18, %v313_v22 }
  0xb7   : > { %v350_v20 = vpop.permute.xlu1 %349 }
  0xb8   : > { %v367_v23 = vadd.f32 %v350_v20, %v339_v19 }
  0xba   : > { %371 = vst [vmem:[%s183_s5] sm:$0xff] %v367_v23 }
  0xbb   : > { %v360_v27 = vpop.permute.xlu1 %359 }
  0xbc   : > { %v369_v28 = vadd.f32 %v360_v27, %v341_v26 }
  0xbe   : > { %373 = vst [vmem:[%s183_s5 + $0x10] sm:$0xff] %v369_v28 }
  0xbf   : > { %v365_v30 = vpop.permute.xlu1 %364 }
  0xc0   : > { %v370_v31 = vadd.f32 %v365_v30, %v342_v29 }
  0xc2   : > { %374 = vst [vmem:[%s183_s5 + $0x18] sm:$0xff] %v370_v31 }
  0xc3   : > { %564 = shalt.err (!%p561_p5)
}
  0xc4   : > { %s565_s23 = scalar_lea.hbm %s751_s10, 512  ;;  %s569_s28 = scalar_lea.hbm %s804_s3, 1024 }
  0xc5   : > { %p566_p6 = scmp.ne.s32.totalorder %s751_s10, %s565_s23  ;;  %p570_p10 = scmp.lt.u32.totalorder %s751_s10, %s804_s3 }
  0xc6   : > { %p571_p11 = scmp.lt.u32.totalorder %s569_s28, %s565_s23  ;;  %p573_p13 = scmp.lt.u32.totalorder %s565_s23, %s751_s10 }
  0xc7   : > { %p567_p7 = pnand %p566_p6, %p698_p4 }
  0xc8   : > { %p572_p12 = por %p571_p11, %p570_p10 }
  0xc9   : > { %p568_p9 = pneg %p567_p7 }
  0xca   : > { %p574_p0 = por %p573_p13, %p572_p12 }
  0xcc   : > { %p575_p1 = pnand %p574_p0, %p568_p9 }
  0xce   : > { %578 = shalt.err (!%p575_p1)
}
  0xcf   : > { %s636_s4 = smov 128   ;;  %s637_s5 = smov 8  }
  0xd0   : > { %478 = dma.vmem_to_hbm [thread:$0]  (%p698_p4), %s746_s6, 512, %s751_s10, %s755_s11, %s636_s4, %s636_s4, %s637_s5  }
  0xd1 PF: > { %p484_p2 = scmp.ge.s32.totalorder %s629_s17, 2  ;;  %s405_s7 = sand.u32 1, %s609_s12  }
  0xd2   : > { %s406_s8 = scalar_lea.sflag [#allocation3], %s405_s7 }
  0xd3   : > { %p481_p3 = pnand %p484_p2, %p705_p8 }
  0xd5   : > { %604 = dma.done.wait (!%p481_p3), %s406_s8, 512  }
  0xd6   : > { %606 = vsyncadd (!%p481_p3), %s406_s8, 4294966784  ;;  %s16_s17 = sadd.s32 1, %s629_s17   ;;  %s807_s12 = smov %s613_s13 }
  0xd7   : > { %p13_p5 = scmp.ge.s32.totalorder %s16_s17, 4   ;;  %s808_s13 = smov %s617_s14 }
  0xd8   : > { %s809_s14 = smov %s711_s25  ;;  %s810_s15 = smov %s625_s16 }
  0xd9   : > { %s811_s16 = smov %s813_s20  ;;  %15 = sbr.rel (!%p13_p5) target bundleno = 4 (0x4), region = 67 }
  0xe0   :  { %411 = vsyncpa [#allocation3], 1 }
  0xe1   :  { %413 = vsyncpa [#allocation3 + $0x1], 1 }

</bundles_post_ra>
